<compile_context>
chip_gen: v6e
topology: v6e:2x2x1
jax: 0.10.0
libtpu: 0.0.40
codegen_flags: <defaults>
</compile_context>

<pallas_src>
import functools

import jax
import jax.numpy as jnp
from jax.experimental import pallas as pl
from jax.experimental.pallas import tpu as pltpu


def _round_up(x, m):
    return ((x + m - 1) // m) * m


def _ffn_ln_kernel(x_ref, w1_ref, b1_ref, w2_ref, b2_ref, g_ref, beta_ref,
                   o_ref, *, eps):
    # Matmuls in the model dtype (MXU native); accumulate in f32.
    x = x_ref[...]                                                       # (tm, d_in)

    h = jnp.dot(x, w1_ref[...], preferred_element_type=jnp.float32)     # (tm, d_hid) f32
    h = jnp.maximum(h + b1_ref[...].astype(jnp.float32), 0.0)

    y = jnp.dot(h.astype(w2_ref.dtype), w2_ref[...],
                preferred_element_type=jnp.float32)                     # (tm, d_in) f32
    y = y + b2_ref[...].astype(jnp.float32)

    # TODO(synk): training-mode dropout (pltpu.prng_random_bits + mask) omitted;
    # eval mode -> identity, matching model.eval().
    y = y + x.astype(jnp.float32)                                        # residual

    # Fused one-pass LayerNorm statistics: var = E[y^2] - E[y]^2 (fine in f32).
    inv_d = 1.0 / y.shape[-1]
    mean = jnp.sum(y, axis=-1, keepdims=True) * inv_d
    mean_sq = jnp.sum(y * y, axis=-1, keepdims=True) * inv_d
    var = mean_sq - mean * mean

    y_norm = (y - mean) * jax.lax.rsqrt(var + eps)
    out = y_norm * g_ref[...].astype(jnp.float32) + beta_ref[...].astype(jnp.float32)

    o_ref[...] = out.astype(o_ref.dtype)


def _const_spec(block_shape):
    """BlockSpec for a grid-invariant operand; single-buffer it when supported."""
    index_map = lambda i: (0,) * len(block_shape)
    if hasattr(pl, "Buffered"):
        try:
            return pl.BlockSpec(block_shape, index_map, pipeline_mode=pl.Buffered(1))
        except TypeError:  # older BlockSpec without pipeline_mode kwarg
            pass
    return pl.BlockSpec(block_shape, index_map)


def prepare_ffn_params(w1, b1, w2, b2, gamma, beta):
    """One-time parameter prep: hoists transposes/reshapes out of the hot path.

    PyTorch Linear layout: w1 (d_hid, d_in), w2 (d_in, d_hid).
    """
    d_hid, d_in = w1.shape
    return {
        "w1t": jnp.asarray(w1).T,                 # (d_in, d_hid)
        "b1": jnp.asarray(b1).reshape(1, d_hid),
        "w2t": jnp.asarray(w2).T,                 # (d_hid, d_in)
        "b2": jnp.asarray(b2).reshape(1, d_in),
        "gamma": jnp.asarray(gamma).reshape(1, d_in),
        "beta": jnp.asarray(beta).reshape(1, d_in),
    }


def positionwise_feed_forward(x, params, *, eps=1e-6, row_tile=256):
    """x: (B, S, d_in). params: output of prepare_ffn_params."""
    B, S, d_in = x.shape
    d_hid = params["w1t"].shape[1]
    N = B * S
    x2d = x.reshape(N, d_in)

    # Bounded, aligned row tile: multiple of the sublane pack (8 f32 / 16 bf16),
    # capped at `row_tile` (multiple of 128 -> clean MXU M tiles, >=2 grid steps
    # for real sequence lengths so v7x's two TensorCores both get work).
    sub = 16 if x.dtype == jnp.bfloat16 else 8
    tm = min(_round_up(row_tile, sub), _round_up(N, sub))
    num_tiles = pl.cdiv(N, tm)
    n_pad = num_tiles * tm
    if n_pad != N:
        x2d = jnp.pad(x2d, ((0, n_pad - N), (0, 0)))

    itm = jnp.dtype(x.dtype).itemsize
    w_itm = jnp.dtype(params["w1t"].dtype).itemsize

    # VMEM budget: single-buffered weights + double-buffered x/out tiles + f32
    # intermediates; 2x headroom, clamped to a range safe on v5e/v6e/v7x.
    vmem_est = (
        2 * d_in * d_hid * w_itm                      # W1^T + W2^T resident
        + 2 * (d_hid + 3 * d_in) * w_itm              # small vectors
        + 2 * tm * d_in * itm                         # x tile, double-buffered
        + 2 * tm * d_in * itm                         # out tile, double-buffered
        + tm * d_hid * 4 + 4 * tm * d_in * 4          # f32 intermediates
    )
    vmem_limit = int(min(max(2 * vmem_est, 16 * 1024 * 1024), 48 * 1024 * 1024))

    cost = pl.CostEstimate(
        flops=4 * N * d_in * d_hid + 10 * N * d_in,
        transcendentals=N,
        bytes_accessed=(2 * N * d_in * itm
                        + 2 * d_in * d_hid * w_itm
                        + (d_hid + 3 * d_in) * w_itm),
    )

    out = pl.pallas_call(
        functools.partial(_ffn_ln_kernel, eps=eps),
        out_shape=jax.ShapeDtypeStruct((n_pad, d_in), x.dtype),
        grid_spec=pltpu.PrefetchScalarGridSpec(
            num_scalar_prefetch=0,
            grid=(num_tiles,),
            in_specs=[
                pl.BlockSpec((tm, d_in), lambda i: (i, 0)),   # x rows (pipelined)
                _const_spec((d_in, d_hid)),                   # W1^T (resident)
                _const_spec((1, d_hid)),                      # b1
                _const_spec((d_hid, d_in)),                   # W2^T (resident)
                _const_spec((1, d_in)),                       # b2
                _const_spec((1, d_in)),                       # gamma
                _const_spec((1, d_in)),                       # beta
            ],
            out_specs=pl.BlockSpec((tm, d_in), lambda i: (i, 0)),
        ),
        compiler_params=pltpu.CompilerParams(
            dimension_semantics=("parallel",),
            vmem_limit_bytes=vmem_limit,
        ),
        cost_estimate=cost,
    )(x2d, params["w1t"], params["b1"], params["w2t"], params["b2"],
      params["gamma"], params["beta"])

    if n_pad != N:
        out = out[:N]
    return out.reshape(B, S, d_in)


def _reference(x, w1, b1, w2, b2, gamma, beta, eps=1e-6):
    hi = jax.lax.Precision.HIGHEST
    h = jnp.maximum(jnp.einsum("bsd,hd->bsh", x, w1, precision=hi) + b1, 0.0)
    y = jnp.einsum("bsh,dh->bsd", h, w2, precision=hi) + b2
    y = y + x
    mean = jnp.mean(y, axis=-1, keepdims=True)
    var = jnp.mean(jnp.square(y - mean), axis=-1, keepdims=True)
    return (y - mean) * jax.lax.rsqrt(var + eps) * gamma + beta


if __name__ == "__main__":
    # Lane-dense small shape: d_in / d_hid multiples of 128 (real deployments
    # should keep feature dims 128-aligned; sub-128 lanes waste the MXU/VPU).
    B, S, d_in, d_hid = 2, 8, 128, 256

    key = jax.random.PRNGKey(0)
    kx, k1, k2, k3, k4 = jax.random.split(key, 5)

    x = jax.random.normal(kx, (B, S, d_in), dtype=jnp.float32)
    # Deterministic synthetic "Linear"-style params (not a checkpoint load).
    w1 = jax.random.normal(k1, (d_hid, d_in), dtype=jnp.float32) * (1.0 / jnp.sqrt(d_in))
    b1 = jax.random.normal(k2, (d_hid,), dtype=jnp.float32) * 0.01
    w2 = jax.random.normal(k3, (d_in, d_hid), dtype=jnp.float32) * (1.0 / jnp.sqrt(d_hid))
    b2 = jax.random.normal(k4, (d_in,), dtype=jnp.float32) * 0.01
    gamma = jnp.ones((d_in,), dtype=jnp.float32)
    beta = jnp.zeros((d_in,), dtype=jnp.float32)

    # One-time param prep (transposes hoisted out of the per-call hot path).
    params = prepare_ffn_params(w1, b1, w2, b2, gamma, beta)

    out = positionwise_feed_forward(x, params)
    out = jax.block_until_ready(out)

    ref = _reference(x, w1, b1, w2, b2, gamma, beta)
    assert out.shape == x.shape and out.dtype == x.dtype
    assert jnp.allclose(out, ref, atol=2e-4, rtol=2e-4), "mismatch vs reference"

    print("KERNEL_OK")
</pallas_src>

<mosaic_0001>
module attributes {stable_mosaic.version = 11 : i64} {
  func.func @_ffn_ln_kernel(%arg0: i32, %arg1: memref<16x128xf32, #tpu.memory_space<vmem>>, %arg2: memref<128x256xf32, #tpu.memory_space<vmem>>, %arg3: memref<1x256xf32, #tpu.memory_space<vmem>>, %arg4: memref<256x128xf32, #tpu.memory_space<vmem>>, %arg5: memref<1x128xf32, #tpu.memory_space<vmem>>, %arg6: memref<1x128xf32, #tpu.memory_space<vmem>>, %arg7: memref<1x128xf32, #tpu.memory_space<vmem>>, %arg8: memref<16x128xf32, #tpu.memory_space<vmem>>) attributes {dimension_semantics = [#tpu.dimension_semantics<parallel>], iteration_bounds = array<i64: 1>, scalar_prefetch = 0 : i64, scratch_operands = 0 : i64, tpu.core_type = #tpu.core_type<tc>, window_params = [{transform_indices = @transform_0, window_bounds = array<i64: 16, 128>}, {pipeline_mode = #tpu.pipeline_mode<synchronous>, transform_indices = @transform_1, window_bounds = array<i64: 128, 256>}, {pipeline_mode = #tpu.pipeline_mode<synchronous>, transform_indices = @transform_2, window_bounds = array<i64: 1, 256>}, {pipeline_mode = #tpu.pipeline_mode<synchronous>, transform_indices = @transform_3, window_bounds = array<i64: 256, 128>}, {pipeline_mode = #tpu.pipeline_mode<synchronous>, transform_indices = @transform_4, window_bounds = array<i64: 1, 128>}, {pipeline_mode = #tpu.pipeline_mode<synchronous>, transform_indices = @transform_5, window_bounds = array<i64: 1, 128>}, {pipeline_mode = #tpu.pipeline_mode<synchronous>, transform_indices = @transform_6, window_bounds = array<i64: 1, 128>}, {transform_indices = @transform_7, window_bounds = array<i64: 16, 128>}]} {
    %c0 = arith.constant 0 : index
    %c0_0 = arith.constant 0 : index
    %0 = vector.load %arg1[%c0, %c0_0] : memref<16x128xf32, #tpu.memory_space<vmem>>, vector<16x128xf32>
    %c0_1 = arith.constant 0 : index
    %c0_2 = arith.constant 0 : index
    %1 = vector.load %arg2[%c0_1, %c0_2] : memref<128x256xf32, #tpu.memory_space<vmem>>, vector<128x256xf32>
    %cst = arith.constant dense<0.000000e+00> : vector<16x256xf32>
    %2 = tpu.matmul %0, %1, %cst {dimension_numbers = #tpu.dot_dimension_numbers<[1], [0], [0], [1], [0, 0, 1, 1], [], []>} : vector<16x128xf32>, vector<128x256xf32>, vector<16x256xf32> -> vector<16x256xf32>
    %c0_3 = arith.constant 0 : index
    %c0_4 = arith.constant 0 : index
    %3 = vector.load %arg3[%c0_3, %c0_4] : memref<1x256xf32, #tpu.memory_space<vmem>>, vector<1x256xf32>
    %4 = vector.broadcast %3 : vector<1x256xf32> to vector<16x256xf32>
    %5 = arith.addf %2, %4 : vector<16x256xf32>
    %cst_5 = arith.constant 0.000000e+00 : f32
    %6 = vector.broadcast %cst_5 : f32 to vector<16x256xf32>
    %7 = arith.maximumf %5, %6 : vector<16x256xf32>
    %c0_6 = arith.constant 0 : index
    %c0_7 = arith.constant 0 : index
    %8 = vector.load %arg4[%c0_6, %c0_7] : memref<256x128xf32, #tpu.memory_space<vmem>>, vector<256x128xf32>
    %cst_8 = arith.constant dense<0.000000e+00> : vector<16x128xf32>
    %9 = tpu.matmul %7, %8, %cst_8 {dimension_numbers = #tpu.dot_dimension_numbers<[1], [0], [0], [1], [0, 0, 1, 1], [], []>} : vector<16x256xf32>, vector<256x128xf32>, vector<16x128xf32> -> vector<16x128xf32>
    %c0_9 = arith.constant 0 : index
    %c0_10 = arith.constant 0 : index
    %10 = vector.load %arg5[%c0_9, %c0_10] : memref<1x128xf32, #tpu.memory_space<vmem>>, vector<1x128xf32>
    %11 = vector.broadcast %10 : vector<1x128xf32> to vector<16x128xf32>
    %12 = arith.addf %9, %11 : vector<16x128xf32>
    %13 = arith.addf %12, %0 : vector<16x128xf32>
    %cst_11 = arith.constant dense<0.000000e+00> : vector<16xf32>
    %14 = vector.multi_reduction <add>, %13, %cst_11 [1] : vector<16x128xf32> to vector<16xf32>
    %15 = vector.shape_cast %14 : vector<16xf32> to vector<16x1xf32>
    %cst_12 = arith.constant 7.812500e-03 : f32
    %16 = vector.broadcast %cst_12 : f32 to vector<16x1xf32>
    %17 = arith.mulf %15, %16 : vector<16x1xf32>
    %18 = arith.mulf %13, %13 : vector<16x128xf32>
    %cst_13 = arith.constant dense<0.000000e+00> : vector<16xf32>
    %19 = vector.multi_reduction <add>, %18, %cst_13 [1] : vector<16x128xf32> to vector<16xf32>
    %20 = vector.shape_cast %19 : vector<16xf32> to vector<16x1xf32>
    %cst_14 = arith.constant 7.812500e-03 : f32
    %21 = vector.broadcast %cst_14 : f32 to vector<16x1xf32>
    %22 = arith.mulf %20, %21 : vector<16x1xf32>
    %23 = arith.mulf %17, %17 : vector<16x1xf32>
    %24 = arith.subf %22, %23 : vector<16x1xf32>
    %25 = vector.broadcast %17 : vector<16x1xf32> to vector<16x128xf32>
    %26 = arith.subf %13, %25 : vector<16x128xf32>
    %cst_15 = arith.constant 9.99999997E-7 : f32
    %27 = vector.broadcast %cst_15 : f32 to vector<16x1xf32>
    %28 = arith.addf %24, %27 : vector<16x1xf32>
    %29 = math.rsqrt %28 : vector<16x1xf32>
    %30 = vector.broadcast %29 : vector<16x1xf32> to vector<16x128xf32>
    %31 = arith.mulf %26, %30 : vector<16x128xf32>
    %c0_16 = arith.constant 0 : index
    %c0_17 = arith.constant 0 : index
    %32 = vector.load %arg6[%c0_16, %c0_17] : memref<1x128xf32, #tpu.memory_space<vmem>>, vector<1x128xf32>
    %33 = vector.broadcast %32 : vector<1x128xf32> to vector<16x128xf32>
    %34 = arith.mulf %31, %33 : vector<16x128xf32>
    %c0_18 = arith.constant 0 : index
    %c0_19 = arith.constant 0 : index
    %35 = vector.load %arg7[%c0_18, %c0_19] : memref<1x128xf32, #tpu.memory_space<vmem>>, vector<1x128xf32>
    %36 = vector.broadcast %35 : vector<1x128xf32> to vector<16x128xf32>
    %37 = arith.addf %34, %36 : vector<16x128xf32>
    %c0_20 = arith.constant 0 : index
    %c0_21 = arith.constant 0 : index
    %38 = vector.load %arg8[%c0_20, %c0_21] : memref<16x128xf32, #tpu.memory_space<vmem>>, vector<16x128xf32>
    tpu.vector_store %arg8[%c0_20, %c0_21], %37 {strides = array<i32>} : memref<16x128xf32, #tpu.memory_space<vmem>>, vector<16x128xf32>,
    return
  }
  func.func @transform_0(%arg0: i32) -> (i32, i32) {
    %c0_i32 = arith.constant 0 : i32
    %c0_i32_0 = arith.constant 0 : i32
    return %arg0, %c0_i32 : i32, i32
  }
  func.func @transform_1(%arg0: i32) -> (i32, i32) {
    %c0_i32 = arith.constant 0 : i32
    %c0_i32_0 = arith.constant 0 : i32
    %c0_i32_1 = arith.constant 0 : i32
    return %c0_i32, %c0_i32_0 : i32, i32
  }
  func.func @transform_2(%arg0: i32) -> (i32, i32) {
    %c0_i32 = arith.constant 0 : i32
    %c0_i32_0 = arith.constant 0 : i32
    %c0_i32_1 = arith.constant 0 : i32
    return %c0_i32, %c0_i32_0 : i32, i32
  }
  func.func @transform_3(%arg0: i32) -> (i32, i32) {
    %c0_i32 = arith.constant 0 : i32
    %c0_i32_0 = arith.constant 0 : i32
    %c0_i32_1 = arith.constant 0 : i32
    return %c0_i32, %c0_i32_0 : i32, i32
  }
  func.func @transform_4(%arg0: i32) -> (i32, i32) {
    %c0_i32 = arith.constant 0 : i32
    %c0_i32_0 = arith.constant 0 : i32
    %c0_i32_1 = arith.constant 0 : i32
    return %c0_i32, %c0_i32_0 : i32, i32
  }
  func.func @transform_5(%arg0: i32) -> (i32, i32) {
    %c0_i32 = arith.constant 0 : i32
    %c0_i32_0 = arith.constant 0 : i32
    %c0_i32_1 = arith.constant 0 : i32
    return %c0_i32, %c0_i32_0 : i32, i32
  }
  func.func @transform_6(%arg0: i32) -> (i32, i32) {
    %c0_i32 = arith.constant 0 : i32
    %c0_i32_0 = arith.constant 0 : i32
    %c0_i32_1 = arith.constant 0 : i32
    return %c0_i32, %c0_i32_0 : i32, i32
  }
  func.func @transform_7(%arg0: i32) -> (i32, i32) {
    %c0_i32 = arith.constant 0 : i32
    %c0_i32_0 = arith.constant 0 : i32
    return %arg0, %c0_i32 : i32, i32
  }
}

</mosaic_0001>

<bundles_post_ra>
// kernel: tpu_custom_call.1
= control target key start
LH: loop header
LB: loop body
LE: loop exit
PB: predicated region body
PF: predicated region fallthrough
CT: control target
= control target key end

     0   :  { %12 = vsyncpa [#allocation3], 0  ;;  %s603_s0 = inlined_call_operand.hbm [shape: f32[16,128], index: 0, kind: input, shape index: {}]   ;;  %s604_s1 = inlined_call_operand.hbm [shape: f32[128,256], index: 1, kind: input, shape index: {}]   ;;  %s605_s2 = inlined_call_operand.vmem [shape: f32[1,256], index: 2, kind: input, shape index: {}]   ;;  %s606_s3 = inlined_call_operand.hbm [shape: f32[256,128], index: 3, kind: input, shape index: {}]   ;;  %s607_s4 = inlined_call_operand.vmem [shape: f32[1,128], index: 4, kind: input, shape index: {}]   ;;  %s608_s5 = inlined_call_operand.vmem [shape: f32[1,128], index: 5, kind: input, shape index: {}]   ;;  %s609_s6 = inlined_call_operand.vmem [shape: f32[1,128], index: 6, kind: input, shape index: {}]   ;;  %s610_s7 = inlined_call_operand.hbm [shape: f32[16,128], index: 7, kind: output, shape index: {}]  }
   0x1   :  { %13 = vsyncpa [#allocation6], 0 }
   0x2   :  { %14 = vsyncpa [#allocation4], 0  ;;  %s515_s24 = smov [#allocation5]  }
   0x3   :  { %s32_s25 = sshll.u32 %s515_s24, 4  ;;  %s33_s25 = int_to_ptr.vmem [resolvable:$true] %s32_s25 }
   0x4   :  { %s437_s26 = scalar_lea.vmem %s33_s25, 4096  ;;  %p442_p1 = scmp.lt.s32.totalorder %s33_s25, %s33_s25 }
   0x5   :  { %p438_p0 = scmp.ne.s32.totalorder %s33_s25, %s437_s26  ;;  %p443_p2 = scmp.lt.s32.totalorder %s437_s26, %s437_s26 }
   0x7   :  { %p444_p3 = por %p443_p2, %p442_p1 }
   0x9   :  { %p445_p4 = pnand %p444_p3, %p438_p0 }
   0xb   :  { %448 = shalt.err (!%p445_p4)
}
   0xc   :  { %s516_s27 = smov 256   ;;  %s517_s28 = smov 16  }
   0xd   :  { %38 = dma.hbm_to_vmem [thread:$0]  %s604_s1, 4096, %s33_s25, [#allocation6], %s516_s27, %s516_s27, %s517_s28  }
   0xe   :  { %s518_s8 = smov [#allocation2]  }
   0xf   :  { %s20_s9 = sshll.u32 %s518_s8, 4  ;;  %s21_s9 = int_to_ptr.vmem [resolvable:$true] %s20_s9 }
  0x10   :  { %s457_s10 = scalar_lea.vmem %s21_s9, 256  ;;  %p462_p6 = scmp.lt.s32.totalorder %s21_s9, %s21_s9 }
  0x11   :  { %p458_p5 = scmp.ne.s32.totalorder %s21_s9, %s457_s10  ;;  %p463_p7 = scmp.lt.s32.totalorder %s457_s10, %s457_s10 }
  0x13   :  { %p464_p8 = por %p463_p7, %p462_p6 }
  0x15   :  { %p465_p9 = pnand %p464_p8, %p458_p5 }
  0x17   :  { %468 = shalt.err (!%p465_p9)
}
  0x18   :  { %s519_s11 = smov 128   ;;  %s520_s12 = smov 8  }
  0x19   :  { %26 = dma.hbm_to_vmem [thread:$0]  %s603_s0, 256, %s21_s9, [#allocation3], %s519_s11, %s519_s11, %s520_s12  }
  0x1a   :  { %s521_s1 = smov [#allocation7]  }
  0x1b   :  { %s46_s15 = sshll.u32 %s521_s1, 4  ;;  %s47_s15 = int_to_ptr.vmem [resolvable:$true] %s46_s15 }
  0x1c   :  { %s477_s16 = scalar_lea.vmem %s47_s15, 4096  ;;  %p482_p11 = scmp.lt.s32.totalorder %s47_s15, %s47_s15 }
  0x1d   :  { %p478_p10 = scmp.ne.s32.totalorder %s47_s15, %s477_s16  ;;  %p483_p12 = scmp.lt.s32.totalorder %s477_s16, %s477_s16 }
  0x1f   :  { %p484_p13 = por %p483_p12, %p482_p11 }
  0x21   :  { %p485_p0 = pnand %p484_p13, %p478_p10 }
  0x23   :  { %488 = shalt.err (!%p485_p0)
}
  0x24   :  { %52 = dma.hbm_to_vmem [thread:$0]  %s606_s3, 4096, %s47_s15, [#allocation6], %s519_s11, %s519_s11, %s520_s12  }
  0x25   :  { %509 = dma.done.wait [#allocation3], 256  }
  0x26   :  { %510 = vsyncadd [#allocation3], 4294967040 }
  0x27   :  { %511 = dma.done.wait [#allocation6], 8192  }
  0x28   :  { %512 = vsyncadd [#allocation6], 4294959104  ;;  %v522_v0 = vmov 0.0   ;;  %v101_v1 = vld [vmem:[#allocation5 + $0xf8] sm:$0xff]  ;;  %v100_v2 = vld [vmem:[#allocation5 + $0xf0] sm:$0xff]  ;;  %s523_s23 = smov [#allocation8]  }
  0x29   :  { %178 = vmatprep.mubr.f32.mxu0 %v522_v0  ;;  %v99_v3 = vld [vmem:[#allocation5 + $0xe8] sm:$0xff]  ;;  %114 = vmatprep.subr.mxu0 %v101_v1  ;;  %v98_v4 = vld [vmem:[#allocation5 + $0xe0] sm:$0xff]  ;;  %v97_v5 = vld [vmem:[#allocation5 + $0xd8] sm:$0xff]  ;;  %s362_s24 = sshll.u32 %s523_s23, 4  ;;  %s363_s24 = int_to_ptr.vmem [resolvable:$true] %s362_s24 }
  0x2a   :  { %115 = vmatpush1.msra.mxu0 %v100_v2  ;;  %v96_v6 = vld [vmem:[#allocation5 + $0xd0] sm:$0xff]  ;;  %v95_v7 = vld [vmem:[#allocation5 + $0xc8] sm:$0xff]  ;;  %v94_v8 = vld [vmem:[#allocation5 + $0xc0] sm:$0xff]  ;;  %s489_s25 = scalar_lea.vmem %s363_s24, 256  ;;  %p494_p2 = scmp.lt.s32.totalorder %s363_s24, %s363_s24 }
  0x2b   :  { %116 = vmatprep.subr.mxu0 %v99_v3  ;;  %v93_v9 = vld [vmem:[#allocation5 + $0xb8] sm:$0xff]  ;;  %v92_v10 = vld [vmem:[#allocation5 + $0xb0] sm:$0xff]  ;;  %v91_v11 = vld [vmem:[#allocation5 + $0xa8] sm:$0xff]  ;;  %p490_p1 = scmp.ne.s32.totalorder %s363_s24, %s489_s25  ;;  %p495_p3 = scmp.lt.s32.totalorder %s489_s25, %s489_s25 }
  0x2c   :  { %117 = vmatpush1.msra.mxu0 %v98_v4  ;;  %v90_v12 = vld [vmem:[#allocation5 + $0xa0] sm:$0xff]  ;;  %v89_v13 = vld [vmem:[#allocation5 + $0x98] sm:$0xff]  ;;  %v88_v14 = vld [vmem:[#allocation5 + $0x90] sm:$0xff] }
  0x2d   :  { %118 = vmatprep.subr.mxu0 %v97_v5  ;;  %v226_v15 = vld [vmem:[#allocation7 + $0xf8] sm:$0xff]  ;;  %v87_v17 = vld [vmem:[#allocation5 + $0x88] sm:$0xff]  ;;  %v225_v18 = vld [vmem:[#allocation7 + $0xf0] sm:$0xff]  ;;  %p496_p4 = por %p495_p3, %p494_p2 }
  0x2e   :  { %119 = vmatpush1.msra.mxu0 %v96_v6  ;;  %v210_v16 = vld [vmem:[#allocation7 + $0x78] sm:$0xff]  ;;  %378 = vmatprep.subr.mxu1 %v226_v15  ;;  %v209_v19 = vld [vmem:[#allocation7 + $0x70] sm:$0xff]  ;;  %v86_v20 = vld [vmem:[#allocation5 + $0x80] sm:$0xff] }
  0x2f   :  { %120 = vmatprep.subr.mxu0 %v95_v7  ;;  %379 = vmatpush3.msra.mxu1 %v210_v16  ;;  %v224_v21 = vld [vmem:[#allocation7 + $0xe8] sm:$0xff]  ;;  %v85_v22 = vld [vmem:[#allocation5 + $0x78] sm:$0xff]  ;;  %v84_v24 = vld [vmem:[#allocation5 + $0x70] sm:$0xff]  ;;  %p497_p5 = pnand %p496_p4, %p490_p1 }
  0x30   :  { %121 = vmatpush1.msra.mxu0 %v94_v8  ;;  %380 = vmatprep.subr.mxu1 %v225_v18  ;;  %v208_v23 = vld [vmem:[#allocation7 + $0x68] sm:$0xff]  ;;  %v223_v25 = vld [vmem:[#allocation7 + $0xe0] sm:$0xff]  ;;  %v222_v29 = vld [vmem:[#allocation7 + $0xd8] sm:$0xff] }
  0x31   :  { %122 = vmatprep.subr.mxu0 %v93_v9  ;;  %381 = vmatpush3.msra.mxu1 %v209_v19  ;;  %v83_v26 = vld [vmem:[#allocation5 + $0x68] sm:$0xff]  ;;  %v207_v27 = vld [vmem:[#allocation7 + $0x60] sm:$0xff]  ;;  %v81_v30 = vld [vmem:[#allocation5 + $0x58] sm:$0xff] }
  0x32   :  { %123 = vmatpush1.msra.mxu0 %v92_v10  ;;  %382 = vmatprep.subr.mxu1 %v224_v21  ;;  %v82_v28 = vld [vmem:[#allocation5 + $0x60] sm:$0xff]  ;;  %v206_v31 = vld [vmem:[#allocation7 + $0x58] sm:$0xff]  ;;  %v80_v32 = vld [vmem:[#allocation5 + $0x50] sm:$0xff] }
  0x33   :  { %124 = vmatprep.subr.mxu0 %v91_v11  ;;  %383 = vmatpush3.msra.mxu1 %v208_v23  ;;  %v221_v33 = vld [vmem:[#allocation7 + $0xd0] sm:$0xff]  ;;  %v79_v34 = vld [vmem:[#allocation5 + $0x48] sm:$0xff]  ;;  %v78_v36 = vld [vmem:[#allocation5 + $0x40] sm:$0xff] }
  0x34   :  { %125 = vmatpush1.msra.mxu0 %v90_v12  ;;  %384 = vmatprep.subr.mxu1 %v223_v25  ;;  %v205_v35 = vld [vmem:[#allocation7 + $0x50] sm:$0xff]  ;;  %v220_v37 = vld [vmem:[#allocation7 + $0xc8] sm:$0xff]  ;;  %v77_v38 = vld [vmem:[#allocation5 + $0x38] sm:$0xff] }
  0x35   :  { %126 = vmatprep.subr.mxu0 %v89_v13  ;;  %385 = vmatpush3.msra.mxu1 %v207_v27  ;;  %v204_v39 = vld [vmem:[#allocation7 + $0x48] sm:$0xff]  ;;  %v76_v40 = vld [vmem:[#allocation5 + $0x30] sm:$0xff]  ;;  %v219_v41 = vld [vmem:[#allocation7 + $0xc0] sm:$0xff] }
  0x36   :  { %127 = vmatpush1.msra.mxu0 %v88_v14  ;;  %386 = vmatprep.subr.mxu1 %v222_v29  ;;  %v75_v42 = vld [vmem:[#allocation5 + $0x28] sm:$0xff]  ;;  %v203_v43 = vld [vmem:[#allocation7 + $0x40] sm:$0xff]  ;;  %v218_v45 = vld [vmem:[#allocation7 + $0xb8] sm:$0xff] }
  0x37   :  { %128 = vmatprep.subr.mxu0 %v87_v17  ;;  %387 = vmatpush3.msra.mxu1 %v206_v31  ;;  %v74_v44 = vld [vmem:[#allocation5 + $0x20] sm:$0xff]  ;;  %v73_v46 = vld [vmem:[#allocation5 + $0x18] sm:$0xff]  ;;  %v72_v48 = vld [vmem:[#allocation5 + $0x10] sm:$0xff] }
  0x38   :  { %129 = vmatpush1.msra.mxu0 %v86_v20  ;;  %388 = vmatprep.subr.mxu1 %v221_v33  ;;  %v202_v47 = vld [vmem:[#allocation7 + $0x38] sm:$0xff]  ;;  %v217_v49 = vld [vmem:[#allocation7 + $0xb0] sm:$0xff]  ;;  %v71_v50 = vld [vmem:[#allocation5 + $0x8] sm:$0xff] }
  0x39   :  { %130 = vmatprep.subr.mxu0 %v85_v22  ;;  %389 = vmatpush3.msra.mxu1 %v205_v35  ;;  %v201_v51 = vld [vmem:[#allocation7 + $0x30] sm:$0xff]  ;;  %v70_v52 = vld [vmem:[#allocation5] sm:$0xff]  ;;  %v216_v53 = vld [vmem:[#allocation7 + $0xa8] sm:$0xff] }
  0x3a   :  { %131 = vmatpush1.msra.mxu0 %v84_v24  ;;  %390 = vmatprep.subr.mxu1 %v220_v37  ;;  %v580_v54 = vld [vmem:[#allocation2] sm:$0xff]  ;;  %v200_v55 = vld [vmem:[#allocation7 + $0x28] sm:$0xff]  ;;  %v215_v56 = vld [vmem:[#allocation7 + $0xa0] sm:$0xff] }
  0x3b   :  { %132 = vmatprep.subr.mxu0 %v83_v26  ;;  %391 = vmatpush3.msra.mxu1 %v204_v39  ;;  %v199_v57 = vld [vmem:[#allocation7 + $0x20] sm:$0xff]  ;;  %v69_v58 = vld [vmem:[#allocation2 + $0x8] sm:$0xff]  ;;  %v213_v61 = vld [vmem:[#allocation7 + $0x90] sm:$0xff] }
  0x3c   :  { %133 = vmatpush1.msra.mxu0 %v82_v28  ;;  %392 = vmatprep.subr.mxu1 %v219_v41  ;;  %v214_v59 = vld [vmem:[#allocation7 + $0x98] sm:$0xff]  ;;  %v197_v62 = vld [vmem:[#allocation7 + $0x10] sm:$0xff]  ;;  %v212_v63 = vld [vmem:[#allocation7 + $0x88] sm:$0xff] }
  0x3d   :  { %134 = vmatprep.subr.mxu0 %v81_v30  ;;  %393 = vmatpush3.msra.mxu1 %v203_v43  ;;  %v198_v60 = vld [vmem:[#allocation7 + $0x18] sm:$0xff]  ;;  %v196_v1 = vld [vmem:[#allocation7 + $0x8] sm:$0xff]  ;;  %v211_v2 = vld [vmem:[#allocation7 + $0x80] sm:$0xff] }
  0x3e   :  { %135 = vmatpush1.msra.mxu0 %v80_v32  ;;  %394 = vmatprep.subr.mxu1 %v218_v45  ;;  %v195_v3 = vld [vmem:[#allocation7] sm:$0xff]  ;;  %v102_v6 = vld [vmem:[%s605_s2] sm:$0x3] }
  0x3f   :  { %136 = vmatprep.subr.mxu0 %v79_v34  ;;  %395 = vmatpush3.msra.mxu1 %v202_v47  ;;  %v375_v23 = vld [vmem:[%s607_s4] ss:$0 sm:$0xff] }
  0x40   :  { %137 = vmatpush1.msra.mxu0 %v78_v36  ;;  %396 = vmatprep.subr.mxu1 %v217_v49 }
  0x41   :  { %138 = vmatprep.subr.mxu0 %v77_v38  ;;  %397 = vmatpush3.msra.mxu1 %v201_v51  ;;  %v376_v51 = vld [vmem:[%s608_s5] ss:$0 sm:$0xff] }
  0x42   :  { %139 = vmatpush1.msra.mxu0 %v76_v40  ;;  %398 = vmatprep.subr.mxu1 %v216_v53  ;;  %v377_v53 = vld [vmem:[%s609_s6] ss:$0 sm:$0xff] }
  0x43   :  { %140 = vmatprep.subr.mxu0 %v75_v42  ;;  %399 = vmatpush3.msra.mxu1 %v200_v55 }
  0x44   :  { %141 = vmatpush1.msra.mxu0 %v74_v44  ;;  %400 = vmatprep.subr.mxu1 %v215_v56 }
  0x45   :  { %142 = vmatprep.subr.mxu0 %v73_v46  ;;  %401 = vmatpush3.msra.mxu1 %v199_v57 }
  0x46   :  { %143 = vmatpush1.msra.mxu0 %v72_v48  ;;  %402 = vmatprep.subr.mxu1 %v214_v59 }
  0x47   :  { %144 = vmatprep.subr.mxu0 %v71_v50  ;;  %403 = vmatpush3.msra.mxu1 %v198_v60 }
  0x48   :  { %145 = vmatpush1.msra.mxu0 %v70_v52  ;;  %404 = vmatprep.subr.mxu1 %v213_v61 }
  0x49   :  { %179 = vmatmul.mubr.f32.vlgmr.msra.gmra.mxu0 %v580_v54  ;;  %405 = vmatpush3.msra.mxu1 %v197_v62 }
  0x4a   :  { %184 = vmatprep.mubr.f32.mxu0 %v522_v0  ;;  %406 = vmatprep.subr.mxu1 %v212_v63  ;;  %v104_v0 = vlaneseq }
  0x4b   :  { %407 = vmatpush3.msra.mxu1 %v196_v1 }
  0x4c   :  { %408 = vmatprep.subr.mxu1 %v211_v2  ;;  %v105_v4 = vshrl.u32 %v104_v0, 7 }
  0x4d   :  { %185 = vmatmul.mubr.f32.gmra.mxu0 %v69_v58  ;;  %409 = vmatpush3.msra.mxu1 %v195_v3 }
  0x4e   :  { %v106_v5 = vsub.s32 0, %v105_v4  ;;  %v110_v7 = vsub.s32 1, %v105_v4 }
  0x50   :  { %v107_v8 = vrot.slane %v102_v6, %v106_v5  ;;  %v111_v9 = vrot.slane %v102_v6, %v110_v7 }
 0x109   :  { %v180_v10 = vpop.f32.mrf.mxu0 }
 0x10a   :  { %v181_v11 = vadd.f32 %v180_v10, %v107_v8 }
 0x10b   :  { %v182_v12 = vpop.f32.mrf.mxu0 }
 0x10c   :  { %v183_v13 = vadd.f32 %v182_v12, %v111_v9  ;;  %v191_v16 = vmax.f32 %v181_v11, 0.0 }
 0x10d   :  { %v186_v14 = vpop.f32.mrf.mxu0 }
 0x10e   :  { %v192_v15 = vmax.f32 %v183_v13, 0.0  ;;  %v187_v17 = vadd.f32 %v186_v14, %v107_v8 }
 0x10f   :  { %v188_v18 = vpop.f32.mrf.mxu0 }
 0x110   :  { %v189_v19 = vadd.f32 %v188_v18, %v111_v9  ;;  %298 = vmatprep.mubr.f32.mxu1 %v192_v15  ;;  %v193_v21 = vmax.f32 %v187_v17, 0.0 }
 0x111   :  { %299 = vmatmul.mubr.f32.vlgmr.msra.gmra.mxu1 %v191_v16 }
 0x112   :  { %v194_v20 = vmax.f32 %v189_v19, 0.0 }
 0x114   :  { %303 = vmatprep.mubr.f32.mxu1 %v194_v20 }
 0x115   :  { %304 = vmatmul.mubr.f32.gmra.mxu1 %v193_v21 }
 0x1d1   :  { %v410_v22 = vpop.f32.mrf.mxu1 }
 0x1d3   :  { %v411_v24 = vpop.f32.mrf.mxu1 }
 0x1d4   :  { %v412_v25 = vadd.f32 %v411_v24, %v410_v22 }
 0x1d5   :  { %v413_v26 = vpop.f32.mrf.mxu1 }
 0x1d6   :  { %v301_v27 = vadd.f32 %v412_v25, %v375_v23 }
 0x1d7   :  { %v414_v28 = vpop.f32.mrf.mxu1 }
 0x1d8   :  { %v415_v29 = vadd.f32 %v414_v28, %v413_v26  ;;  %v309_v30 = vadd.f32 %v301_v27, %v580_v54 }
 0x1da   :  { %v306_v31 = vadd.f32 %v415_v29, %v375_v23  ;;  %311 = vadd.xlane.f32.xlu0 %v309_v30  ;;  %v317_v32 = vmul.f32 %v309_v30, %v309_v30 }
 0x1dc   :  { %319 = vadd.xlane.f32.xlu1 %v317_v32  ;;  %v310_v33 = vadd.f32 %v306_v31, %v69_v58 }
 0x1de   :  { %313 = vadd.xlane.f32.xlu0 %v310_v33  ;;  %v318_v34 = vmul.f32 %v310_v33, %v310_v33 }
 0x1e0   :  { %321 = vadd.xlane.f32.xlu1 %v318_v34 }
 0x263   :  { %v312_v35 = vpop.xlane.xlu0 %311 }
 0x264   :  { %v315_v36 = vmul.f32 0.0078125, %v312_v35 }
 0x265   :  { %v320_v37 = vpop.xlane.xlu1 %319 }
 0x266   :  { %v325_v38 = vmul.f32 %v315_v36, %v315_v36  ;;  %v323_v39 = vmul.f32 0.0078125, %v320_v37  ;;  %v329_v49 = vsub.f32 %v309_v30, %v315_v36 }
 0x267   :  { %v314_v40 = vpop.xlane.xlu0 %313 }
 0x268   :  { %v327_v41 = vsub.f32 %v323_v39, %v325_v38  ;;  %v316_v42 = vmul.f32 0.0078125, %v314_v40 }
 0x269   :  { %v322_v43 = vpop.xlane.xlu1 %321 }
 0x26a   :  { %v331_v44 = vadd.f32 1e-06, %v327_v41  ;;  %v326_v45 = vmul.f32 %v316_v42, %v316_v42  ;;  %v324_v46 = vmul.f32 0.0078125, %v322_v43  ;;  %v330_v54 = vsub.f32 %v310_v33, %v316_v42 }
 0x26c   :  { %425 = vrsqrt.f32 %v331_v44  ;;  %v328_v47 = vsub.f32 %v324_v46, %v326_v45 }
 0x26e   :  { %v332_v48 = vadd.f32 1e-06, %v328_v47 }
 0x270   :  { %427 = vrsqrt.f32 %v332_v48 }
 0x279   :  { %v426_v50 = vpop.eup %425 }
 0x27a   :  { %v335_v52 = vmul.f32 %v426_v50, %v329_v49 }
 0x27c   :  { %v344_v55 = vmul.f32 %v376_v51, %v335_v52 }
 0x27d   :  { %v428_v56 = vpop.eup %427 }
 0x27e   :  { %v336_v57 = vmul.f32 %v428_v56, %v330_v54  ;;  %v353_v58 = vadd.f32 %v377_v53, %v344_v55 }
 0x280   :  { %v345_v59 = vmul.f32 %v376_v51, %v336_v57  ;;  %355 = vst [vmem:[#allocation8] sm:$0xff] %v353_v58 }
 0x282   :  { %v354_v60 = vadd.f32 %v377_v53, %v345_v59 }
 0x284   :  { %356 = vst [vmem:[#allocation8 + $0x8] sm:$0xff] %v354_v60 }
 0x285   :  { %500 = shalt.err (!%p497_p5)
}
 0x286   :  { %368 = dma.vmem_to_hbm [thread:$0]  %s363_s24, 256, %s610_s7, [#allocation4], %s519_s11, %s519_s11, %s520_s12  }
 0x287   :  { %513 = dma.done.wait [#allocation4], 256  }
 0x288   :  { %514 = vsyncadd [#allocation4], 4294967040 }
 0x289   :  { %372 = vsyncpa [#allocation3], 1 }
 0x28a   :  { %373 = vsyncpa [#allocation6], 1 }
 0x28b   :  { %374 = vsyncpa [#allocation4], 1 }

</bundles_post_ra>
